<compile_context>
chip_gen: v5e
topology: v5e:2x2
jax: 0.10.0
libtpu: 0.0.40
codegen_flags: <defaults>
</compile_context>

<pallas_src>
import jax
import jax.numpy as jnp
from jax.experimental import pallas as pl
from jax.experimental.pallas import tpu as pltpu


def _round_up(v: int, m: int) -> int:
    return ((v + m - 1) // m) * m


# ---------------------------------------------------------------------------
# Kernels
# ---------------------------------------------------------------------------

def _linear_kernel_single_k(x_ref, w_ref, b_ref, o_ref):
    """Whole reduction fits one K tile: direct compute + bias + store."""
    o_ref[...] = (
        jnp.dot(x_ref[...].astype(jnp.bfloat16), w_ref[...],
                preferred_element_type=jnp.float32)
        + b_ref[...]
    ).astype(o_ref.dtype)


def _linear_kernel_f32_out(x_ref, w_ref, b_ref, o_ref):
    """f32 output: accumulate straight into the resident output block."""
    k = pl.program_id(2)

    @pl.when(k == 0)
    def _():
        o_ref[...] = jnp.zeros_like(o_ref)

    o_ref[...] += jnp.dot(x_ref[...].astype(jnp.bfloat16), w_ref[...],
                          preferred_element_type=jnp.float32)

    @pl.when(k == pl.num_programs(2) - 1)
    def _():
        o_ref[...] += b_ref[...]


def _linear_kernel_acc(x_ref, w_ref, b_ref, o_ref, acc_ref):
    """Generic path (non-f32 output): f32 VMEM accumulator, bias on finalize."""
    k = pl.program_id(2)

    @pl.when(k == 0)
    def _():
        acc_ref[...] = jnp.zeros_like(acc_ref)

    acc_ref[...] += jnp.dot(x_ref[...].astype(jnp.bfloat16), w_ref[...],
                            preferred_element_type=jnp.float32)

    @pl.when(k == pl.num_programs(2) - 1)
    def _():
        o_ref[...] = (acc_ref[...] + b_ref[...]).astype(o_ref.dtype)


# ---------------------------------------------------------------------------
# Tile selection & one-time parameter prep
# ---------------------------------------------------------------------------

def _pick_tile(dim: int, pref: int, align: int) -> int:
    """Largest tile <= pref (multiple of `align`), preferring zero padding."""
    padded = _round_up(dim, align)
    start = _round_up(min(pref, padded), align)
    best_t, best_key = start, None
    for t in range(start, 0, -align):
        pad = _round_up(padded, t) - padded
        key = (pad, -t)
        if best_key is None or key < best_key:
            best_key, best_t = key, t
        if pad == 0:
            break
    return best_t


def _choose_col_tiles(N: int, K: int, tn: int, tk: int):
    tn = _pick_tile(N, tn, 128)
    tk = _pick_tile(K, tk, 128)
    Np = _round_up(N, tn)
    Kp = _round_up(K, tk)
    # v7x has 2 TensorCores: if there is only one output-column tile, split it
    # so the "parallel" N grid axis exposes >=2 steps (no effect on v5e/v6e).
    if Np // tn == 1 and tn >= 512 and tn % 256 == 0:
        tn //= 2
    return tn, tk, Np, Kp


def _prepare_params(w, b, tn: int, tk: int):
    """Transpose/pad/cast W and b once (hoisted out of the per-call hot path)."""
    N, K = w.shape
    tn, tk, Np, Kp = _choose_col_tiles(N, K, tn, tk)
    wt = jnp.zeros((Kp, Np), jnp.bfloat16).at[:K, :N].set(
        w.T.astype(jnp.bfloat16))                       # [in_dim, out_dim]
    bp = jnp.zeros((1, Np), jnp.float32).at[0, :N].set(
        b.astype(jnp.float32))
    return wt, bp, tn, tk


# ---------------------------------------------------------------------------
# Pallas call
# ---------------------------------------------------------------------------

def _linear_pallas(x, wt, bp, *, n_out, tm, tn, tk, out_dtype):
    B, K = x.shape
    Kp, Np = wt.shape

    tm = _round_up(min(tm, _round_up(B, 16)), 16)   # bf16 sublane multiple
    Bp = _round_up(B, tm)

    # Feed x untouched when it already tiles cleanly (kernel casts to bf16);
    # otherwise make a single padded bf16 copy.
    if Bp == B and Kp == K:
        xp = x
    else:
        xp = jnp.zeros((Bp, Kp), jnp.bfloat16).at[:B, :K].set(
            x.astype(jnp.bfloat16))

    grid = (Bp // tm, Np // tn, Kp // tk)

    if grid[2] == 1:
        kernel, scratch = _linear_kernel_single_k, []
    elif out_dtype == jnp.float32:
        kernel, scratch = _linear_kernel_f32_out, []
    else:
        kernel, scratch = _linear_kernel_acc, [pltpu.VMEM((tm, tn), jnp.float32)]

    out_itemsize = jnp.dtype(out_dtype).itemsize
    x_itemsize = jnp.dtype(xp.dtype).itemsize
    # Double-buffered inputs/outputs + accumulator (with slack); capped at
    # 48 MiB so it stays safe on v7x's 64 MiB physical VMEM.
    vmem_bytes = (2 * (tm * tk * x_itemsize + tk * tn * 2 + tn * 4
                       + tm * tn * out_itemsize)
                  + tm * tn * 4)
    vmem_limit = min(max(int(1.5 * vmem_bytes), 32 * 1024 * 1024),
                     48 * 1024 * 1024)

    out_padded = pl.pallas_call(
        kernel,
        out_shape=jax.ShapeDtypeStruct((Bp, Np), out_dtype),
        grid_spec=pltpu.PrefetchScalarGridSpec(
            num_scalar_prefetch=0,
            grid=grid,
            in_specs=[
                pl.BlockSpec((tm, tk), lambda i, j, k: (i, k)),   # x
                pl.BlockSpec((tk, tn), lambda i, j, k: (k, j)),   # W^T
                pl.BlockSpec((1, tn), lambda i, j, k: (0, j)),    # bias
            ],
            out_specs=pl.BlockSpec((tm, tn), lambda i, j, k: (i, j)),
            scratch_shapes=scratch,
        ),
        compiler_params=pltpu.CompilerParams(
            dimension_semantics=("parallel", "parallel", "arbitrary"),
            vmem_limit_bytes=vmem_limit,
        ),
    )(xp, wt, bp)

    return out_padded[:B, :n_out]


# ---------------------------------------------------------------------------
# Public API
# ---------------------------------------------------------------------------

def make_single_layer_perceptron(w, b, *, tm=512, tn=512, tk=1024,
                                 out_dtype=None):
    """Prepare (transpose/pad/cast) the weights once; return a jitted fwd(x)."""
    N = w.shape[0]
    wt, bp, tn, tk = _prepare_params(w, b, tn, tk)

    @jax.jit
    def forward(x):
        od = out_dtype if out_dtype is not None else x.dtype
        return _linear_pallas(x, wt, bp, n_out=N, tm=tm, tn=tn, tk=tk,
                              out_dtype=od)

    return forward


def single_layer_perceptron(x, w, b, *, tm=512, tn=512, tk=1024):
    """One-shot convenience wrapper (prefer the factory for repeated calls)."""
    N = w.shape[0]
    wt, bp, tn, tk = _prepare_params(w, b, tn, tk)
    return _linear_pallas(x, wt, bp, n_out=N, tm=tm, tn=tn, tk=tk,
                          out_dtype=x.dtype)


# ---------------------------------------------------------------------------
# Demo / correctness checks
# ---------------------------------------------------------------------------

if __name__ == "__main__":
    key = jax.random.PRNGKey(0)
    k_x, k_w, k_b, k_x2, k_w2, k_b2 = jax.random.split(key, 6)

    # --- 1) Module-sized smoke test (single-K fast path) -------------------
    batch, in_dim, out_dim = 8, 32, 16
    x = jax.random.normal(k_x, (batch, in_dim), dtype=jnp.float32)
    bound = 1.0 / (in_dim ** 0.5)          # PyTorch-style uniform init
    w = jax.random.uniform(k_w, (out_dim, in_dim), minval=-bound, maxval=bound,
                           dtype=jnp.float32)      # [out, in] layout
    b = jax.random.uniform(k_b, (out_dim,), minval=-bound, maxval=bound,
                           dtype=jnp.float32)

    fwd = make_single_layer_perceptron(w, b)
    out = jax.block_until_ready(fwd(x))
    ref = x @ w.T + b
    assert out.shape == (batch, out_dim)
    # bf16 operands on the MXU (f32 accumulation) -> relaxed tolerance.
    assert jnp.allclose(out, ref, atol=3e-2, rtol=3e-2), (
        float(jnp.max(jnp.abs(out - ref))))

    # --- 2) Multi-K-tile path (f32 output accumulates into o_ref) ----------
    B2, K2, N2 = 192, 2300, 384
    x2 = jax.random.normal(k_x2, (B2, K2), dtype=jnp.float32)
    bound2 = 1.0 / (K2 ** 0.5)
    w2 = jax.random.uniform(k_w2, (N2, K2), minval=-bound2, maxval=bound2,
                            dtype=jnp.float32)
    b2 = jax.random.uniform(k_b2, (N2,), minval=-bound2, maxval=bound2,
                            dtype=jnp.float32)
    fwd2 = make_single_layer_perceptron(w2, b2)
    out2 = jax.block_until_ready(fwd2(x2))
    ref2 = x2 @ w2.T + b2
    assert out2.shape == (B2, N2)
    assert jnp.allclose(out2, ref2, atol=3e-2, rtol=3e-2), (
        float(jnp.max(jnp.abs(out2 - ref2))))

    # --- 3) bf16 activations / bf16 output (scratch-accumulator path) ------
    out3 = jax.block_until_ready(
        make_single_layer_perceptron(w2, b2)(x2.astype(jnp.bfloat16)))
    assert out3.dtype == jnp.bfloat16
    assert jnp.allclose(out3.astype(jnp.float32), ref2, atol=8e-2, rtol=8e-2), (
        float(jnp.max(jnp.abs(out3.astype(jnp.float32) - ref2))))

    print("KERNEL_OK")
</pallas_src>

<mosaic_0001>
module attributes {stable_mosaic.version = 11 : i64} {
  func.func @_linear_kernel_single_k(%arg0: i32, %arg1: i32, %arg2: i32, %arg3: memref<16x128xbf16, #tpu.memory_space<vmem>>, %arg4: memref<128x128xbf16, #tpu.memory_space<vmem>>, %arg5: memref<1x128xf32, #tpu.memory_space<vmem>>, %arg6: memref<16x128xf32, #tpu.memory_space<vmem>>) attributes {dimension_semantics = [#tpu.dimension_semantics<parallel>, #tpu.dimension_semantics<parallel>, #tpu.dimension_semantics<arbitrary>], iteration_bounds = array<i64: 1, 1, 1>, scalar_prefetch = 0 : i64, scratch_operands = 0 : i64, tpu.core_type = #tpu.core_type<tc>, window_params = [{transform_indices = @transform_0, window_bounds = array<i64: 16, 128>}, {transform_indices = @transform_1, window_bounds = array<i64: 128, 128>}, {transform_indices = @transform_2, window_bounds = array<i64: 1, 128>}, {transform_indices = @transform_3, window_bounds = array<i64: 16, 128>}]} {
    %c0 = arith.constant 0 : index
    %c0_0 = arith.constant 0 : index
    %0 = vector.load %arg3[%c0, %c0_0] : memref<16x128xbf16, #tpu.memory_space<vmem>>, vector<16x128xbf16>
    %c0_1 = arith.constant 0 : index
    %c0_2 = arith.constant 0 : index
    %1 = vector.load %arg4[%c0_1, %c0_2] : memref<128x128xbf16, #tpu.memory_space<vmem>>, vector<128x128xbf16>
    %cst = arith.constant dense<0.000000e+00> : vector<16x128xf32>
    %2 = tpu.matmul %0, %1, %cst {dimension_numbers = #tpu.dot_dimension_numbers<[1], [0], [0], [1], [0, 0, 1, 1], [], []>} : vector<16x128xbf16>, vector<128x128xbf16>, vector<16x128xf32> -> vector<16x128xf32>
    %c0_3 = arith.constant 0 : index
    %c0_4 = arith.constant 0 : index
    %3 = vector.load %arg5[%c0_3, %c0_4] : memref<1x128xf32, #tpu.memory_space<vmem>>, vector<1x128xf32>
    %4 = vector.broadcast %3 : vector<1x128xf32> to vector<16x128xf32>
    %5 = arith.addf %2, %4 : vector<16x128xf32>
    %c0_5 = arith.constant 0 : index
    %c0_6 = arith.constant 0 : index
    %6 = vector.load %arg6[%c0_5, %c0_6] : memref<16x128xf32, #tpu.memory_space<vmem>>, vector<16x128xf32>
    tpu.vector_store %arg6[%c0_5, %c0_6], %5 {strides = array<i32>} : memref<16x128xf32, #tpu.memory_space<vmem>>, vector<16x128xf32>,
    return
  }
  func.func @transform_0(%arg0: i32, %arg1: i32, %arg2: i32) -> (i32, i32) {
    %c0_i32 = arith.constant 0 : i32
    return %arg0, %arg2 : i32, i32
  }
  func.func @transform_1(%arg0: i32, %arg1: i32, %arg2: i32) -> (i32, i32) {
    %c0_i32 = arith.constant 0 : i32
    return %arg2, %arg1 : i32, i32
  }
  func.func @transform_2(%arg0: i32, %arg1: i32, %arg2: i32) -> (i32, i32) {
    %c0_i32 = arith.constant 0 : i32
    %c0_i32_0 = arith.constant 0 : i32
    return %c0_i32, %arg1 : i32, i32
  }
  func.func @transform_3(%arg0: i32, %arg1: i32, %arg2: i32) -> (i32, i32) {
    %c0_i32 = arith.constant 0 : i32
    return %arg0, %arg1 : i32, i32
  }
}

</mosaic_0001>

<bundles_post_ra>
// kernel: forward.1
= control target key start
LH: loop header
LB: loop body
LE: loop exit
PB: predicated region body
PF: predicated region fallthrough
CT: control target
= control target key end

     0   :  { %8 = vsyncpa [#allocation3], 0  ;;  %s202_s15 = smov [#allocation2]   ;;  %s203_s17 = smov 64   ;;  %s240_s0 = inlined_call_operand.vmem [shape: bf16[16,128], index: 0, kind: input, shape index: {}]   ;;  %s241_s1 = inlined_call_operand.hbm [shape: bf16[128,128], index: 1, kind: input, shape index: {}]   ;;  %s242_s2 = inlined_call_operand.vmem [shape: f32[1,128], index: 2, kind: input, shape index: {}]   ;;  %s243_s3 = inlined_call_operand.vmem [shape: f32[16,128], index: 3, kind: output, shape index: {}]  }
   0x1   :  { %s15_s14 = sshll.u32 %s241_s1, 4  ;;  %s17_s16 = sshll.u32 %s202_s15, 4  ;;  %s16_s14 = int_to_ptr.hbm [resolvable:$true] %s15_s14  ;;  %s18_s16 = int_to_ptr.vmem [resolvable:$true] %s17_s16 }
   0x2   :  { %s204_s18 = smov 4  }
   0x3   :  { %23 = dma.hbm_to_vmem [thread:$0]  %s16_s14, 1024, %s18_s16, [#allocation3], %s203_s17, %s203_s17, %s204_s18  }
   0x4   :  { %200 = dma.done.wait [#allocation3], 1024  }
   0x5   :  { %201 = vsyncadd [#allocation3], 4294966272  ;;  %v171_v0 = vld [vmem:[#allocation2 + $0x38] sm:$0xff]  ;;  %v170_v1 = vld [vmem:[#allocation2 + $0x30] sm:$0xff] }
   0x6   :  { %106 = vmatpush.bf16.msra.mxu0 %v171_v0  ;;  %v169_v2 = vld [vmem:[#allocation2 + $0x28] sm:$0xff]  ;;  %v168_v3 = vld [vmem:[#allocation2 + $0x20] sm:$0xff]  ;;  %v167_v4 = vld [vmem:[#allocation2 + $0x18] sm:$0xff] }
   0x7   :  { %v166_v5 = vld [vmem:[#allocation2 + $0x10] sm:$0xff]  ;;  %v165_v6 = vld [vmem:[#allocation2 + $0x8] sm:$0xff]  ;;  %v164_v7 = vld [vmem:[#allocation2] sm:$0xff] }
   0x8   :  { %v163_v8 = vld [vmem:[%s240_s0] sm:$0xff] }
   0x9   :  { %v175_v9 = vld [vmem:[%s242_s2] ss:$0 sm:$0xff] }
   0xa   :  { %107 = vmatpush.bf16.msra.mxu0 %v170_v1 }
   0xe   :  { %108 = vmatpush.bf16.msra.mxu0 %v169_v2 }
  0x12   :  { %109 = vmatpush.bf16.msra.mxu0 %v168_v3 }
  0x16   :  { %110 = vmatpush.bf16.msra.mxu0 %v167_v4 }
  0x1a   :  { %111 = vmatpush.bf16.msra.mxu0 %v166_v5 }
  0x1e   :  { %112 = vmatpush.bf16.msra.mxu0 %v165_v6 }
  0x22   :  { %113 = vmatpush.bf16.msra.mxu0 %v164_v7 }
  0x25   :  { %114 = vmatmul.bf16.vlgmr.msra.gmra.mxu0 %v163_v8 }
  0xa2   :  { %v115_v10 = vpop.f32.mrf.mxu0 }
  0xa3   :  { %v116_v11 = vadd.f32 %v175_v9, %v115_v10 }
  0xa5   :  { %120 = vst [vmem:[%s243_s3] sm:$0xff] %v116_v11 }
  0xaa   :  { %v117_v12 = vpop.f32.mrf.mxu0 }
  0xab   :  { %v118_v13 = vadd.f32 %v175_v9, %v117_v12 }
  0xad   :  { %121 = vst [vmem:[%s243_s3 + $0x8] sm:$0xff] %v118_v13 }
  0xae   :  { %126 = vsyncpa [#allocation3], 1 }

</bundles_post_ra>
